<compile_context>
chip_gen: v7x
topology: tpu7x:2x2x1
jax: 0.10.0
libtpu: 0.0.40
codegen_flags: <defaults>
</compile_context>

<pallas_src>
import functools

import jax
import jax.numpy as jnp
from jax.experimental import pallas as pl
from jax.experimental.pallas import tpu as pltpu


# ----------------------------------------------------------------------------- kernel

def _weight_eq_obs_kernel(
    w_ref,                         # (TR, C)  native dtype tile of the weight
    prow_min_ref, prow_max_ref,    # (TR, 1)  previous running row min / max (f32)
    colmin_ref, colmax_ref,        # (1, C)   per-tile partial col min / max (f32)
    rowvals_ref,                   # (TR, 8)  f32  lane0 = row_min, lane1 = row_max
    rowinds_ref,                   # (TR, 8)  i32  lane0 = min col idx, lane1 = max col idx
    *, num_valid_rows,
):
    TR, C = w_ref.shape
    w = w_ref[...].astype(jnp.float32)

    if num_valid_rows % TR != 0:
        # Ragged last tile: rows past num_valid_rows contain garbage from the
        # boundary DMA -> mask them out of the column reductions (their per-row
        # results are sliced off by the wrapper anyway).
        row_in_tile = jax.lax.broadcasted_iota(jnp.int32, (TR, 1), 0)
        valid = (pl.program_id(0) * TR + row_in_tile) < num_valid_rows
        w_for_min = jnp.where(valid, w, jnp.inf)
        w_for_max = jnp.where(valid, w, -jnp.inf)
    else:
        w_for_min = w
        w_for_max = w

    # weight_col_obs (PerChannelMinMaxObserver ch_axis=1): per-tile partial,
    # merged across tiles + with the running state in plain JAX.
    colmin_ref[...] = jnp.min(w_for_min, axis=0, keepdims=True)
    colmax_ref[...] = jnp.max(w_for_max, axis=0, keepdims=True)

    # weight_row_obs (PerChannelMinMaxObserver ch_axis=0): running min/max per row.
    row_min = jnp.minimum(prow_min_ref[...], jnp.min(w, axis=1, keepdims=True))
    row_max = jnp.maximum(prow_max_ref[...], jnp.max(w, axis=1, keepdims=True))

    # torch.nonzero(w[i] == running_row_min[i])[0][0]  == first column where the
    # running row-min is attained (same for the max).
    # TODO(synk): torch raises IndexError when the running min/max is not present
    # in the current tensor (possible on a 2nd+ call / NaN rows); we return the
    # sentinel C instead.
    col_ids = jax.lax.broadcasted_iota(jnp.int32, (TR, C), 1)
    sentinel = jnp.int32(C)
    min_ind = jnp.min(jnp.where(w == row_min, col_ids, sentinel), axis=1, keepdims=True)
    max_ind = jnp.min(jnp.where(w == row_max, col_ids, sentinel), axis=1, keepdims=True)

    # Lane-packed per-row outputs: one f32 + one i32 store per tile instead of
    # four last-dim-1 masked stores.
    lane = jax.lax.broadcasted_iota(jnp.int32, (TR, 8), 1)
    rowvals_ref[...] = jnp.where(lane == 0, row_min,
                                 jnp.where(lane == 1, row_max, jnp.float32(0)))
    rowinds_ref[...] = jnp.where(lane == 0, min_ind,
                                 jnp.where(lane == 1, max_ind, sentinel))


# ----------------------------------------------------------------------------- sizing

# ~4 MiB of f32 per tile: tiled mem-bound kernels hit ~85% of HBM roofline well
# below this, and (2x double-buffered native tile + f32/iota temporaries) stays
# under the 32 MiB scoped-VMEM budget on every generation (v5e 16/128 MiB,
# v6e 32/128 MiB, v7x 32/64 MiB scoped-default/physical).
_TARGET_TILE_F32_BYTES = 4 * 1024 * 1024

_VMEM_LIMIT_CACHE = None


def _vmem_limit_bytes():
    """Scoped-VMEM request: half the per-core capacity, clamped to [32, 64] MiB."""
    global _VMEM_LIMIT_CACHE
    if _VMEM_LIMIT_CACHE is None:
        cap = 64 * 1024 * 1024  # assume the smallest per-core VMEM (v7x) if query fails
        try:
            cap = int(getattr(pltpu.get_tpu_info(), "vmem_capacity_bytes", cap)) or cap
        except Exception:
            pass
        _VMEM_LIMIT_CACHE = min(max(cap // 2, 32 * 1024 * 1024), 64 * 1024 * 1024)
    return _VMEM_LIMIT_CACHE


def _pick_tile_rows(num_rows, num_cols):
    rows = _TARGET_TILE_F32_BYTES // max(1, num_cols * 4)
    if rows >= num_rows:
        return num_rows                      # single block (block dims == full dims)
    rows = max(8, rows - rows % 8)           # sublane multiple
    return min(rows, 2048)


# ----------------------------------------------------------------------------- pallas_call wrapper

@functools.partial(jax.jit, static_argnames=("tile_rows", "vmem_limit_bytes"))
def _observe(w, prev_col_min, prev_col_max, prev_row_min, prev_row_max,
             *, tile_rows, vmem_limit_bytes):
    R, C = w.shape
    TR = int(tile_rows)
    num_tiles = (R + TR - 1) // TR
    Rp = num_tiles * TR
    pad = Rp - R

    # Previous running row state, padded to the tile grid (tiny arrays).
    prow_min = jnp.pad(prev_row_min.astype(jnp.float32), (0, pad),
                       constant_values=jnp.inf).reshape(Rp, 1)
    prow_max = jnp.pad(prev_row_max.astype(jnp.float32), (0, pad),
                       constant_values=-jnp.inf).reshape(Rp, 1)

    kernel = functools.partial(_weight_eq_obs_kernel, num_valid_rows=R)

    colmin_p, colmax_p, rowvals, rowinds = pl.pallas_call(
        kernel,
        out_shape=(
            jax.ShapeDtypeStruct((num_tiles, 1, C), jnp.float32),  # partial col min
            jax.ShapeDtypeStruct((num_tiles, 1, C), jnp.float32),  # partial col max
            jax.ShapeDtypeStruct((Rp, 8), jnp.float32),            # packed row min/max
            jax.ShapeDtypeStruct((Rp, 8), jnp.int32),              # packed min/max col idx
        ),
        grid=(num_tiles,),
        in_specs=[
            pl.BlockSpec((TR, C), lambda i: (i, 0)),   # weight tile (native dtype)
            pl.BlockSpec((TR, 1), lambda i: (i, 0)),   # prev running row min
            pl.BlockSpec((TR, 1), lambda i: (i, 0)),   # prev running row max
        ],
        out_specs=[
            pl.BlockSpec((None, 1, C), lambda i: (i, 0, 0)),
            pl.BlockSpec((None, 1, C), lambda i: (i, 0, 0)),
            pl.BlockSpec((TR, 8), lambda i: (i, 0)),
            pl.BlockSpec((TR, 8), lambda i: (i, 0)),
        ],
        compiler_params=pltpu.CompilerParams(
            dimension_semantics=("parallel",),          # no cross-tile state -> v7x can split cores
            vmem_limit_bytes=int(vmem_limit_bytes)),
    )(w, prow_min, prow_max)

    # Tiny reductions / merges with the running state (plain JAX).
    col_min = jnp.minimum(prev_col_min.astype(jnp.float32), jnp.min(colmin_p, axis=(0, 1)))
    col_max = jnp.maximum(prev_col_max.astype(jnp.float32), jnp.max(colmax_p, axis=(0, 1)))
    row_min = rowvals[:R, 0]
    row_max = rowvals[:R, 1]
    min_ind = rowinds[:R, 0]
    max_ind = rowinds[:R, 1]
    return col_min, col_max, row_min, row_max, min_ind, max_ind


# ----------------------------------------------------------------------------- observer

class WeightEqualizationObserver:
    """JAX/Pallas port of torch _WeightEqualizationObserver (qint8, per_tensor_affine)."""

    def __init__(self, quant_min=-128, quant_max=127, tile_rows=None):
        self.quant_min = quant_min
        self.quant_max = quant_max
        self.eps = jnp.float32(1.1920929e-07)  # torch.finfo(torch.float32).eps
        self.tile_rows = tile_rows             # None -> auto-sized per shape / VMEM
        # empty running state (mirrors PerChannelMinMaxObserver's empty min_vals/max_vals)
        self.col_min = None
        self.col_max = None
        self.row_min = None
        self.row_max = None
        self.min_weights_ind = None
        self.max_weights_ind = None
        self.equalization_scale = None

    def __call__(self, w_orig):
        if w_orig.ndim != 2:
            raise ValueError("WeightEqualizationObserver only supports Linear layers")
        R, C = w_orig.shape

        if self.col_min is None:
            pcol_min = jnp.full((C,), jnp.inf, jnp.float32)
            pcol_max = jnp.full((C,), -jnp.inf, jnp.float32)
            prow_min = jnp.full((R,), jnp.inf, jnp.float32)
            prow_max = jnp.full((R,), -jnp.inf, jnp.float32)
        else:
            pcol_min, pcol_max = self.col_min, self.col_max
            prow_min, prow_max = self.row_min, self.row_max

        tile_rows = self.tile_rows if self.tile_rows is not None else _pick_tile_rows(R, C)

        (col_min, col_max, row_min, row_max, min_ind, max_ind) = _observe(
            w_orig, pcol_min, pcol_max, prow_min, prow_max,
            tile_rows=tile_rows, vmem_limit_bytes=_vmem_limit_bytes())

        self.col_min = col_min
        self.col_max = col_max
        self.row_min = row_min
        self.row_max = row_max
        self.min_weights_ind = min_ind
        self.max_weights_ind = max_ind
        return w_orig  # observer returns its input unchanged

    def get_weight_col_minmax(self):
        return self.col_min, self.col_max

    def get_weight_row_minmax(self):
        return self.row_min, self.row_max

    def set_equalization_scale(self, equalization_scale):
        self.equalization_scale = equalization_scale

    def calculate_qparams(self):
        # plain-JAX glue replicating PerChannelMinMaxObserver._calculate_qparams
        # (qint8, per_tensor_affine).
        if self.equalization_scale is None or getattr(self.equalization_scale, "size", 0) == 0:
            # mirrors torch's 4-tuple "warning" early-exit
            return jnp.array([1.0]), jnp.array([0]), jnp.array([1.0]), jnp.array([0])
        if self.min_weights_ind is None or self.max_weights_ind is None:
            return jnp.array([1.0]), jnp.array([0]), jnp.array([1.0]), jnp.array([0])
        min_w, max_w = self.get_weight_row_minmax()
        # TODO(synk): a sentinel index (== num_cols, i.e. the running min/max is absent
        # from the latest weight) makes torch raise IndexError; JAX clamps the gather.
        min_scaled = min_w * (1.0 / self.equalization_scale[self.min_weights_ind])
        max_scaled = max_w * (1.0 / self.equalization_scale[self.max_weights_ind])
        min_neg = jnp.minimum(min_scaled, 0.0)
        max_pos = jnp.maximum(max_scaled, 0.0)
        scale = (max_pos - min_neg) / float(self.quant_max - self.quant_min)
        scale = jnp.maximum(scale, self.eps)
        zero_point = self.quant_min - jnp.round(min_neg / scale)
        zero_point = jnp.clip(zero_point, self.quant_min, self.quant_max).astype(jnp.int32)
        return scale, zero_point


# ----------------------------------------------------------------------------- reference + demo

def _ref_observe(w, pcol_min, pcol_max, prow_min, prow_max):
    wf = w.astype(jnp.float32)
    C = w.shape[1]
    col_min = jnp.minimum(pcol_min, wf.min(axis=0))
    col_max = jnp.maximum(pcol_max, wf.max(axis=0))
    row_min = jnp.minimum(prow_min, wf.min(axis=1))
    row_max = jnp.maximum(prow_max, wf.max(axis=1))
    ids = jnp.arange(C, dtype=jnp.int32)
    min_ind = jnp.where(wf == row_min[:, None], ids, C).min(axis=1)
    max_ind = jnp.where(wf == row_max[:, None], ids, C).min(axis=1)
    return col_min, col_max, row_min, row_max, min_ind, max_ind


def _check(obs, ref, w, out):
    col_min, col_max, row_min, row_max, min_ind, max_ind = ref
    assert jnp.allclose(obs.col_min, col_min)
    assert jnp.allclose(obs.col_max, col_max)
    assert jnp.allclose(obs.row_min, row_min)
    assert jnp.allclose(obs.row_max, row_max)
    assert jnp.array_equal(obs.min_weights_ind, min_ind)
    assert jnp.array_equal(obs.max_weights_ind, max_ind)
    assert jnp.array_equal(out, w)


if __name__ == "__main__":
    key = jax.random.PRNGKey(0)
    k1, k2, k3, k4 = jax.random.split(key, 4)
    INF = jnp.inf

    # --- test 1: f32, multi-tile (grid pipelining + partial-col merge), aligned
    R1, C1 = 32, 128
    w1 = jax.random.normal(k1, (R1, C1), dtype=jnp.float32)
    obs = WeightEqualizationObserver(tile_rows=8)      # force 4 row tiles
    out1 = obs(w1)
    jax.block_until_ready(out1)
    ref1 = _ref_observe(w1,
                        jnp.full((C1,), INF, jnp.float32), jnp.full((C1,), -INF, jnp.float32),
                        jnp.full((R1,), INF, jnp.float32), jnp.full((R1,), -INF, jnp.float32))
    _check(obs, ref1, w1, out1)

    # --- test 2: second call on the same observer (running-state merge)
    w2 = 2.0 * jax.random.normal(k2, (R1, C1), dtype=jnp.float32)
    out2 = obs(w2)
    jax.block_until_ready(out2)
    ref2 = _ref_observe(w2, ref1[0], ref1[1], ref1[2], ref1[3])
    _check(obs, ref2, w2, out2)

    # --- test 3: bf16 weight stays in native dtype in HBM (no wrapper cast)
    R3, C3 = 32, 128
    w3 = jax.random.normal(k3, (R3, C3), dtype=jnp.float32).astype(jnp.bfloat16)
    obs3 = WeightEqualizationObserver(tile_rows=16)
    out3 = obs3(w3)
    jax.block_until_ready(out3)
    ref3 = _ref_observe(w3,
                        jnp.full((C3,), INF, jnp.float32), jnp.full((C3,), -INF, jnp.float32),
                        jnp.full((R3,), INF, jnp.float32), jnp.full((R3,), -INF, jnp.float32))
    _check(obs3, ref3, w3, out3)

    # --- test 4: ragged row count (masked last tile)
    R4, C4 = 20, 96
    w4 = jax.random.normal(k4, (R4, C4), dtype=jnp.float32)
    obs4 = WeightEqualizationObserver(tile_rows=8)     # 3 tiles, last has 4 valid rows
    out4 = obs4(w4)
    jax.block_until_ready(out4)
    ref4 = _ref_observe(w4,
                        jnp.full((C4,), INF, jnp.float32), jnp.full((C4,), -INF, jnp.float32),
                        jnp.full((R4,), INF, jnp.float32), jnp.full((R4,), -INF, jnp.float32))
    _check(obs4, ref4, w4, out4)

    # --- exercise qparams glue with a deterministic equalization scale
    obs.set_equalization_scale(jnp.linspace(0.5, 1.5, C1, dtype=jnp.float32))
    scale, zp = obs.calculate_qparams()
    jax.block_until_ready((scale, zp))

    print("KERNEL_OK")
</pallas_src>

<mosaic_0001>
module attributes {stable_mosaic.version = 11 : i64} {
  func.func @_weight_eq_obs_kernel(%arg0: i32, %arg1: memref<8x128xf32, #tpu.memory_space<vmem>>, %arg2: memref<8x1xf32, #tpu.memory_space<vmem>>, %arg3: memref<8x1xf32, #tpu.memory_space<vmem>>, %arg4: memref<1x1x128xf32, #tpu.memory_space<vmem>>, %arg5: memref<1x1x128xf32, #tpu.memory_space<vmem>>, %arg6: memref<8x8xf32, #tpu.memory_space<vmem>>, %arg7: memref<8x8xi32, #tpu.memory_space<vmem>>) attributes {dimension_semantics = [#tpu.dimension_semantics<parallel>], iteration_bounds = array<i64: 4>, scalar_prefetch = 0 : i64, scratch_operands = 0 : i64, tpu.core_type = #tpu.core_type<tc>, window_params = [{transform_indices = @transform_0, window_bounds = array<i64: 8, 128>}, {transform_indices = @transform_1, window_bounds = array<i64: 8, 1>}, {transform_indices = @transform_2, window_bounds = array<i64: 8, 1>}, {transform_indices = @transform_3, window_bounds = array<i64: 1, 1, 128>}, {transform_indices = @transform_4, window_bounds = array<i64: 1, 1, 128>}, {transform_indices = @transform_5, window_bounds = array<i64: 8, 8>}, {transform_indices = @transform_6, window_bounds = array<i64: 8, 8>}]} {
    %c0 = arith.constant 0 : index
    %c0_0 = arith.constant 0 : index
    %0 = vector.load %arg1[%c0, %c0_0] : memref<8x128xf32, #tpu.memory_space<vmem>>, vector<8x128xf32>
    %cst = arith.constant dense<0x7F800000> : vector<128xf32>
    %1 = vector.multi_reduction <minimumf>, %0, %cst [0] : vector<8x128xf32> to vector<128xf32>
    %2 = vector.shape_cast %1 : vector<128xf32> to vector<1x128xf32>
    %c0_1 = arith.constant 0 : index
    %c0_2 = arith.constant 0 : index
    %c0_3 = arith.constant 0 : index
    %3 = vector.load %arg4[%c0_1, %c0_2, %c0_3] : memref<1x1x128xf32, #tpu.memory_space<vmem>>, vector<1x1x128xf32>
    %4 = vector.shape_cast %3 : vector<1x1x128xf32> to vector<1x128xf32>
    %5 = vector.shape_cast %2 : vector<1x128xf32> to vector<1x1x128xf32>
    tpu.vector_store %arg4[%c0_1, %c0_2, %c0_3], %5 {strides = array<i32>} : memref<1x1x128xf32, #tpu.memory_space<vmem>>, vector<1x1x128xf32>,
    %cst_4 = arith.constant dense<0xFF800000> : vector<128xf32>
    %6 = vector.multi_reduction <maximumf>, %0, %cst_4 [0] : vector<8x128xf32> to vector<128xf32>
    %7 = vector.shape_cast %6 : vector<128xf32> to vector<1x128xf32>
    %c0_5 = arith.constant 0 : index
    %c0_6 = arith.constant 0 : index
    %c0_7 = arith.constant 0 : index
    %8 = vector.load %arg5[%c0_5, %c0_6, %c0_7] : memref<1x1x128xf32, #tpu.memory_space<vmem>>, vector<1x1x128xf32>
    %9 = vector.shape_cast %8 : vector<1x1x128xf32> to vector<1x128xf32>
    %10 = vector.shape_cast %7 : vector<1x128xf32> to vector<1x1x128xf32>
    tpu.vector_store %arg5[%c0_5, %c0_6, %c0_7], %10 {strides = array<i32>} : memref<1x1x128xf32, #tpu.memory_space<vmem>>, vector<1x1x128xf32>,
    %c0_8 = arith.constant 0 : index
    %c0_9 = arith.constant 0 : index
    %11 = vector.load %arg2[%c0_8, %c0_9] : memref<8x1xf32, #tpu.memory_space<vmem>>, vector<8x1xf32>
    %cst_10 = arith.constant dense<0x7F800000> : vector<8xf32>
    %12 = vector.multi_reduction <minimumf>, %0, %cst_10 [1] : vector<8x128xf32> to vector<8xf32>
    %13 = vector.shape_cast %12 : vector<8xf32> to vector<8x1xf32>
    %14 = arith.minimumf %11, %13 : vector<8x1xf32>
    %c0_11 = arith.constant 0 : index
    %c0_12 = arith.constant 0 : index
    %15 = vector.load %arg3[%c0_11, %c0_12] : memref<8x1xf32, #tpu.memory_space<vmem>>, vector<8x1xf32>
    %cst_13 = arith.constant dense<0xFF800000> : vector<8xf32>
    %16 = vector.multi_reduction <maximumf>, %0, %cst_13 [1] : vector<8x128xf32> to vector<8xf32>
    %17 = vector.shape_cast %16 : vector<8xf32> to vector<8x1xf32>
    %18 = arith.maximumf %15, %17 : vector<8x1xf32>
    %19 = tpu.iota {dimensions = array<i32: 1>} : vector<8x128xi32>
    %20 = vector.broadcast %14 : vector<8x1xf32> to vector<8x128xf32>
    %21 = arith.cmpf oeq, %0, %20 : vector<8x128xf32>
    %c128_i32 = arith.constant 128 : i32
    %22 = vector.broadcast %c128_i32 : i32 to vector<8x128xi32>
    %23 = arith.select %21, %19, %22 : vector<8x128xi1>, vector<8x128xi32>
    %cst_14 = arith.constant dense<2147483647> : vector<8xi32>
    %24 = vector.multi_reduction <minsi>, %23, %cst_14 [1] : vector<8x128xi32> to vector<8xi32>
    %25 = vector.shape_cast %24 : vector<8xi32> to vector<8x1xi32>
    %26 = vector.broadcast %18 : vector<8x1xf32> to vector<8x128xf32>
    %27 = arith.cmpf oeq, %0, %26 : vector<8x128xf32>
    %c128_i32_15 = arith.constant 128 : i32
    %28 = vector.broadcast %c128_i32_15 : i32 to vector<8x128xi32>
    %29 = arith.select %27, %19, %28 : vector<8x128xi1>, vector<8x128xi32>
    %cst_16 = arith.constant dense<2147483647> : vector<8xi32>
    %30 = vector.multi_reduction <minsi>, %29, %cst_16 [1] : vector<8x128xi32> to vector<8xi32>
    %31 = vector.shape_cast %30 : vector<8xi32> to vector<8x1xi32>
    %32 = tpu.iota {dimensions = array<i32: 1>} : vector<8x8xi32>
    %c0_i32 = arith.constant 0 : i32
    %33 = vector.broadcast %c0_i32 : i32 to vector<8x8xi32>
    %34 = arith.cmpi eq, %32, %33 : vector<8x8xi32>
    %c1_i32 = arith.constant 1 : i32
    %35 = vector.broadcast %c1_i32 : i32 to vector<8x8xi32>
    %36 = arith.cmpi eq, %32, %35 : vector<8x8xi32>
    %cst_17 = arith.constant 0.000000e+00 : f32
    %37 = vector.shape_cast %18 : vector<8x1xf32> to vector<8x1xf32>
    %38 = vector.broadcast %37 : vector<8x1xf32> to vector<8x8xf32>
    %39 = vector.broadcast %cst_17 : f32 to vector<8x8xf32>
    %40 = arith.select %36, %38, %39 : vector<8x8xi1>, vector<8x8xf32>
    %41 = vector.shape_cast %14 : vector<8x1xf32> to vector<8x1xf32>
    %42 = vector.broadcast %41 : vector<8x1xf32> to vector<8x8xf32>
    %43 = arith.select %34, %42, %40 : vector<8x8xi1>, vector<8x8xf32>
    %c0_18 = arith.constant 0 : index
    %c0_19 = arith.constant 0 : index
    %44 = vector.load %arg6[%c0_18, %c0_19] : memref<8x8xf32, #tpu.memory_space<vmem>>, vector<8x8xf32>
    tpu.vector_store %arg6[%c0_18, %c0_19], %43 {strides = array<i32>} : memref<8x8xf32, #tpu.memory_space<vmem>>, vector<8x8xf32>,
    %c0_i32_20 = arith.constant 0 : i32
    %45 = vector.broadcast %c0_i32_20 : i32 to vector<8x8xi32>
    %46 = arith.cmpi eq, %32, %45 : vector<8x8xi32>
    %c1_i32_21 = arith.constant 1 : i32
    %47 = vector.broadcast %c1_i32_21 : i32 to vector<8x8xi32>
    %48 = arith.cmpi eq, %32, %47 : vector<8x8xi32>
    %c128_i32_22 = arith.constant 128 : i32
    %49 = vector.shape_cast %31 : vector<8x1xi32> to vector<8x1xi32>
    %50 = vector.broadcast %49 : vector<8x1xi32> to vector<8x8xi32>
    %51 = vector.broadcast %c128_i32_22 : i32 to vector<8x8xi32>
    %52 = arith.select %48, %50, %51 : vector<8x8xi1>, vector<8x8xi32>
    %53 = vector.shape_cast %25 : vector<8x1xi32> to vector<8x1xi32>
    %54 = vector.broadcast %53 : vector<8x1xi32> to vector<8x8xi32>
    %55 = arith.select %46, %54, %52 : vector<8x8xi1>, vector<8x8xi32>
    %c0_23 = arith.constant 0 : index
    %c0_24 = arith.constant 0 : index
    %56 = vector.load %arg7[%c0_23, %c0_24] : memref<8x8xi32, #tpu.memory_space<vmem>>, vector<8x8xi32>
    tpu.vector_store %arg7[%c0_23, %c0_24], %55 {strides = array<i32>} : memref<8x8xi32, #tpu.memory_space<vmem>>, vector<8x8xi32>,
    return
  }
  func.func @transform_0(%arg0: i32) -> (i32, i32) {
    %c0_i32 = arith.constant 0 : i32
    %c0_i32_0 = arith.constant 0 : i32
    return %arg0, %c0_i32 : i32, i32
  }
  func.func @transform_1(%arg0: i32) -> (i32, i32) {
    %c0_i32 = arith.constant 0 : i32
    %c0_i32_0 = arith.constant 0 : i32
    return %arg0, %c0_i32 : i32, i32
  }
  func.func @transform_2(%arg0: i32) -> (i32, i32) {
    %c0_i32 = arith.constant 0 : i32
    %c0_i32_0 = arith.constant 0 : i32
    return %arg0, %c0_i32 : i32, i32
  }
  func.func @transform_3(%arg0: i32) -> (i32, i32, i32) {
    %c0_i32 = arith.constant 0 : i32
    %c0_i32_0 = arith.constant 0 : i32
    %c0_i32_1 = arith.constant 0 : i32
    return %arg0, %c0_i32, %c0_i32_0 : i32, i32, i32
  }
  func.func @transform_4(%arg0: i32) -> (i32, i32, i32) {
    %c0_i32 = arith.constant 0 : i32
    %c0_i32_0 = arith.constant 0 : i32
    %c0_i32_1 = arith.constant 0 : i32
    return %arg0, %c0_i32, %c0_i32_0 : i32, i32, i32
  }
  func.func @transform_5(%arg0: i32) -> (i32, i32) {
    %c0_i32 = arith.constant 0 : i32
    %c0_i32_0 = arith.constant 0 : i32
    return %arg0, %c0_i32 : i32, i32
  }
  func.func @transform_6(%arg0: i32) -> (i32, i32) {
    %c0_i32 = arith.constant 0 : i32
    %c0_i32_0 = arith.constant 0 : i32
    return %arg0, %c0_i32 : i32, i32
  }
}

</mosaic_0001>

<bundles_post_ra>
// kernel: _observe.1
= control target key start
LH: loop header
LB: loop body
LE: loop exit
PB: predicated region body
PF: predicated region fallthrough
CT: control target
= control target key end

     0   :  { %s609_s21 = smov 0   ;;  %s654_s0 = inlined_call_operand.vmem [shape: f32[32,128], index: 0, kind: input, shape index: {}]   ;;  %s655_s1 = inlined_call_operand.vmem [shape: f32[32,1], index: 1, kind: input, shape index: {}]   ;;  %s656_s2 = inlined_call_operand.vmem [shape: f32[32,1], index: 2, kind: input, shape index: {}]   ;;  %s657_s3 = inlined_call_operand.vmem [shape: f32[4,1,128], index: 3, kind: output, shape index: {0}]   ;;  %s658_s4 = inlined_call_operand.vmem [shape: f32[4,1,128], index: 4, kind: output, shape index: {1}]   ;;  %s659_s5 = inlined_call_operand.vmem [shape: f32[32,8], index: 5, kind: output, shape index: {2}]   ;;  %s660_s6 = inlined_call_operand.vmem [shape: s32[32,8], index: 6, kind: output, shape index: {3}]  }
   0x1 LB: > { %s542_s22 = sadd.s32 4294967295, %s571_s21   ;;  %p546_p0 = scmp.ge.s32.totalorder %s571_s21, 1  ;;  %s571_s21 = sphi %s609_s21, %s17_s21  }
   0x2   : > { %p236_p1 = scmp.lt.s32.totalorder %s571_s21, 5 }
   0x4   : > { %p237_p2 = pnand %p546_p0, %p236_p1 }
   0x5   : > { %p282_p3 = scmp.lt.s32.totalorder (!%p237_p2), %s542_s22, 3  ;;  %v573_v12 = vmov (!%p237_p2), 0   ;;  %v331_v19 = vlaneseq (!%p237_p2)  ;;  %vm379_vm3 = vcmask (!%p237_p2), 64512  }
   0x6   : > { %240 = sbr.rel (%p237_p2) target bundleno = 591 (0x24f), region = 32  ;;  %563 = vset.pattern.permute.xlu1 (!%p237_p2), %v573_v12  ;;  %564 = vset.pattern.permute.xlu0 (!%p237_p2), %v573_v12 }
   0x7   : > { %v332_v20 = vand.u32 (!%p237_p2), 127, %v331_v19 }
   0x9   : > { %vm376_vm0 = vcmp.eq.s32.totalorder (!%p237_p2), %v332_v20, 1  ;;  %vm375_vm2 = vcmp.eq.s32.totalorder (!%p237_p2), %v332_v20, 0 }
   0xd   : > { %s662_s22 = smov (!%p282_p3, %s542_s22), 3 }
   0xe   : > { %s617_s23 = sshll.u32 %s662_s22, 3  ;;  %s296_s29 = scalar_lea.vmem %s657_s3, %s662_s22 }
   0xf   : > { %s285_s26 = scalar_lea.vmem %s654_s0, %s617_s23  ;;  %s299_s8 = scalar_lea.vmem %s658_s4, %s662_s22 }
  0x10   : > { %v308_v0 = vld [vmem:[%s285_s26] sm:$0xff]  ;;  %s293_s11 = scalar_lea.vmem %s656_s2, %s617_s23  ;;  %s289_s14 = scalar_lea.vmem %s655_s1, %s617_s23 }
  0x11   : > { %328 = vmax.xlane.f32.xlu0 %v308_v0  ;;  %v309_v1 = vrot.slane %v308_v0, 4  ;;  %v327_v13 = vld [vmem:[%s293_s11] sm:$0xff]  ;;  %s303_s17 = scalar_lea.vmem %s659_s5, %s617_s23  ;;  %s307_s20 = scalar_lea.vmem %s660_s6, %s617_s23 }
  0x12   : > { %v323_v16 = vld [vmem:[%s289_s14] sm:$0xff] }
  0x13   : > { %v310_v2 = vmin.f32 %v308_v0, %v309_v1  ;;  %v317_v3 = vmax.f32 %v308_v0, %v309_v1 }
  0x15   : > { %v311_v4 = vrot.slane %v310_v2, 2  ;;  %v318_v5 = vrot.slane %v317_v3, 2  ;;  %324 = vmin.xlane.f32.xlu0 %v308_v0 }
  0x17   : > { %v312_v6 = vmin.f32 %v310_v2, %v311_v4  ;;  %v319_v7 = vmax.f32 %v317_v3, %v318_v5 }
  0x19   : > { %v313_v8 = vrot.slane %v312_v6, 1  ;;  %v320_v9 = vrot.slane %v319_v7, 1 }
  0x1b   : > { %v314_v10 = vmin.f32 %v312_v6, %v313_v8  ;;  %v321_v11 = vmax.f32 %v319_v7, %v320_v9 }
  0x1d   : > { %315 = vst [vmem:[%s296_s29] sm:$0x1] %v314_v10  ;;  %322 = vst [vmem:[%s299_s8] sm:$0x1] %v321_v11 }
  0x9e   : > { %v329_v14 = vpop.xlane.xlu0 %328 }
  0x9f   : > { %v330_v15 = vmax.f32 %v327_v13, %v329_v14 }
  0xa1   : > { %356 = vperm.xlu1 %563, %v330_v15  }
  0xa2   : > { %v325_v17 = vpop.xlane.xlu0 %324 }
  0xa3   : > { %v326_v18 = vmin.f32 %v323_v16, %v325_v17 }
  0xa5   : > { %335 = vperm.xlu1 %563, %v326_v18  }
 0x120   : > { %v357_v21 = vpop.permute.xlu1 %356 }
 0x121   : > { %vm359_vm1 = vcmp.eq.f32.partialorder %v308_v0, %v357_v21  ;;  %v377_v24 = vsel %vm376_vm0, %v357_v21, 0.0 }
 0x122   : > { %v360_v22 = vsel %vm359_vm1, %v332_v20, 128 }
 0x123   : > { %v362_v23 = vshra.s32 %v360_v22, 16  ;;  %v361_v31 = vand.u32 65535, %v360_v22 }
 0x124   : > { %v336_v25 = vpop.permute.xlu1 %335 }
 0x125   : > { %vm338_vm4 = vcmp.eq.f32.partialorder %v308_v0, %v336_v25  ;;  %v378_v26 = vsel %vm375_vm2, %v336_v25, %v377_v24  ;;  %v364_v27 = vcvt.s32.f32 %v362_v23  ;;  %v363_v33 = vcvt.s32.f32 %v361_v31 }
 0x126   : > { %v339_v28 = vsel %vm338_vm4, %v332_v20, 128  ;;  %380 = vst.msk [vmem:[%s303_s17] sm:$0xff] %vm379_vm3, %v378_v26 }
 0x127   : > { %365 = vmin.xlane.f32.xlu0 %v364_v27  ;;  %v341_v29 = vshra.s32 %v339_v28, 16  ;;  %v340_v34 = vand.u32 65535, %v339_v28 }
 0x129   : > { %v343_v30 = vcvt.s32.f32 %v341_v29  ;;  %v342_v37 = vcvt.s32.f32 %v340_v34 }
 0x12b   : > { %344 = vmin.xlane.f32.xlu1 %v343_v30 }
 0x1b4   : > { %v366_v32 = vpop.xlane.xlu0 %365 }
 0x1b5   : > { %vm367_vm5 = vcmp.eq.f32.partialorder %v364_v27, %v366_v32  ;;  %v372_v39 = vcvt.f32.s32 %v366_v32 }
 0x1b6   : > { %v368_v35 = vsel %vm367_vm5, %v363_v33, inf }
 0x1b7   : > { %369 = vmin.xlane.f32.xlu0 %v368_v35  ;;  %v373_v43 = vshll.u32 %v372_v39, 16 }
 0x1b8   : > { %v345_v36 = vpop.xlane.xlu1 %344 }
 0x1b9   : > { %vm346_vm6 = vcmp.eq.f32.partialorder %v343_v30, %v345_v36  ;;  %v351_v41 = vcvt.f32.s32 %v345_v36 }
 0x1ba   : > { %v347_v38 = vsel %vm346_vm6, %v342_v37, inf }
 0x1bb   : > { %348 = vmin.xlane.f32.xlu0 %v347_v38  ;;  %v352_v46 = vshll.u32 %v351_v41, 16 }
 0x244   : > { %v370_v40 = vpop.xlane.xlu0 %369 }
 0x245   : > { %v371_v42 = vcvt.f32.s32 %v370_v40 }
 0x247   : > { %v374_v44 = vadd.s32 %v373_v43, %v371_v42 }
 0x248   : > { %v349_v45 = vpop.xlane.xlu0 %348 }
 0x249   : > { %v350_v47 = vcvt.f32.s32 %v349_v45  ;;  %v381_v49 = vsel %vm376_vm0, %v374_v44, 128 }
 0x24b   : > { %v353_v48 = vadd.s32 %v352_v46, %v350_v47 }
 0x24d   : > { %v382_v50 = vsel %vm375_vm2, %v353_v48, %v381_v49 }
 0x24e   : > { %383 = vst.msk [vmem:[%s307_s20] sm:$0xff] %vm379_vm3, %v382_v50 }
 0x24f PF: > { %s17_s21 = sadd.s32 1, %s571_s21  }
 0x250   : > { %p14_p4 = scmp.ge.s32.totalorder %s17_s21, 6  }
 0x252   :  { %16 = sbr.rel (!%p14_p4) target bundleno = 1 (0x1), region = 104 }

</bundles_post_ra>
